<compile_context>
chip_gen: v5e
topology: v5e:2x2
jax: 0.10.0
libtpu: 0.0.40
codegen_flags: <defaults>
</compile_context>

<pallas_src>
import math
import functools

import jax
import jax.numpy as jnp
from jax.experimental import pallas as pl
from jax.experimental.pallas import tpu as pltpu


def _layernorm_kernel(x_ref, gamma_ref, beta_ref, o_ref, *, eps, features, k):
    # x_ref     : (T, k*features) block of rows; each row holds k logical rows
    # gamma_ref : (1, features) scale (resident, same for every segment)
    # beta_ref  : (1, features) shift (resident)
    # o_ref     : (T, k*features) output block (lane-dense when k*features==128)
    x = x_ref[...].astype(jnp.float32)
    g = gamma_ref[...].astype(jnp.float32)
    b = beta_ref[...].astype(jnp.float32)

    inv_f = 1.0 / float(features)
    # torch.std default is unbiased (Bessel); features == 1 -> NaN, same as torch.
    inv_fm1 = float("nan") if features == 1 else 1.0 / float(features - 1)

    pieces = []
    for j in range(k):  # static unroll; k is small (<= 16)
        xj = x[:, j * features:(j + 1) * features]          # (T, features)
        # Fused one-pass statistics: sum and sum-of-squares together.
        s = jnp.sum(xj, axis=-1, keepdims=True)              # (T, 1)
        sq = jnp.sum(xj * xj, axis=-1, keepdims=True)        # (T, 1)
        mean = s * inv_f
        # var = (sum(x^2) - F*mean^2) / (F-1); clamp tiny negative cancellation.
        var = jnp.maximum(sq - mean * s, 0.0) * inv_fm1
        std = jnp.sqrt(var)
        # Per-row reciprocal (T values) instead of a per-element divide.
        inv = pl.reciprocal(std + eps, approx=False)          # (T, 1)
        pieces.append(g * ((xj - mean) * inv) + b)

    y = pieces[0] if k == 1 else jnp.concatenate(pieces, axis=-1)
    o_ref[...] = y.astype(o_ref.dtype)                        # single dense store


def layer_normalization(x, gamma, beta, *, eps=1e-6):
    """LayerNorm over the last axis of x. gamma/beta: (features,)."""
    orig_shape = x.shape
    features = int(orig_shape[-1])
    rows = int(math.prod(orig_shape[:-1]))  # empty prod -> 1 for 1-D inputs

    # ---- narrow-feature lane folding -------------------------------------
    # Fold k = 128 // features consecutive rows into one 128-lane row so that
    # input loads and output stores are lane-dense (biggest lever for F<128).
    k = 1
    if features < 128 and 128 % features == 0:
        cand = 128 // features
        if cand <= 16 and rows % cand == 0:
            k = cand
    lanes = k * features
    frows = rows // k

    x2 = x.reshape(frows, lanes)              # contiguous reshape: free
    gamma2 = gamma.reshape(1, features)
    beta2 = beta.reshape(1, features)

    # ---- VMEM-aware block sizing -----------------------------------------
    try:
        vmem_cap = int(pltpu.get_tpu_info().vmem_capacity_bytes)
    except Exception:
        vmem_cap = 64 * 1024 * 1024           # assume smallest (v7x) if unknown
    vmem_limit = min((vmem_cap * 3) // 4, 96 * 1024 * 1024)   # ~25% headroom
    target_block_bytes = (4 * 1024 * 1024 if vmem_cap >= 96 * 1024 * 1024
                          else 2 * 1024 * 1024)

    def _rup8(n):
        return ((n + 7) // 8) * 8

    row_bytes = lanes * x2.dtype.itemsize
    t = max(8, (target_block_bytes // max(row_bytes, 1)) // 8 * 8)
    t = min(t, _rup8(frows))
    if frows > 8:
        # Guarantee >= 2 grid steps so "parallel" can shard across both TCs (v7x).
        t = min(t, _rup8(pl.cdiv(frows, 2)))
    t = max(t, 8)

    grid = (pl.cdiv(frows, t),)               # ragged last block: no padding

    out2 = pl.pallas_call(
        functools.partial(_layernorm_kernel, eps=float(eps),
                          features=features, k=k),
        out_shape=jax.ShapeDtypeStruct((frows, lanes), x.dtype),
        grid_spec=pltpu.PrefetchScalarGridSpec(
            num_scalar_prefetch=0,
            grid=grid,
            in_specs=[
                pl.BlockSpec((t, lanes), lambda i: (i, 0)),      # x rows
                pl.BlockSpec((1, features), lambda i: (0, 0)),   # gamma (resident)
                pl.BlockSpec((1, features), lambda i: (0, 0)),   # beta  (resident)
            ],
            out_specs=pl.BlockSpec((t, lanes), lambda i: (i, 0)),
        ),
        compiler_params=pltpu.CompilerParams(
            dimension_semantics=("parallel",),   # rows independent -> megacore
            vmem_limit_bytes=vmem_limit,
        ),
    )(x2, gamma2, beta2)

    return out2.reshape(orig_shape)


if __name__ == "__main__":
    # Small deterministic setup consistent with the module: (batch, seq, hidden)
    B, S, H = 2, 8, 32
    eps = 1e-6

    key = jax.random.PRNGKey(0)
    k_x, k_g, k_b = jax.random.split(key, 3)

    x = jax.random.normal(k_x, (B, S, H), dtype=jnp.float32)
    # Module init is gamma=ones, beta=zeros; perturb slightly to exercise the
    # affine path while staying close to the nn.Parameter semantics.
    gamma = jnp.ones((H,), jnp.float32) + 0.1 * jax.random.normal(k_g, (H,), jnp.float32)
    beta = jnp.zeros((H,), jnp.float32) + 0.1 * jax.random.normal(k_b, (H,), jnp.float32)

    out = layer_normalization(x, gamma, beta, eps=eps)
    out = jax.block_until_ready(out)

    # Plain-JAX reference of the PyTorch forward (unbiased std, eps added to std).
    mean = jnp.mean(x, axis=-1, keepdims=True)
    std = jnp.std(x, axis=-1, keepdims=True, ddof=1)
    ref = gamma * (x - mean) / (std + eps) + beta

    assert out.shape == (B, S, H)
    assert jnp.allclose(out, ref, atol=1e-5, rtol=1e-5), float(jnp.max(jnp.abs(out - ref)))

    print("KERNEL_OK")
</pallas_src>

<mosaic_0001>
module attributes {stable_mosaic.version = 11 : i64} {
  func.func @_layernorm_kernel(%arg0: i32, %arg1: memref<8x128xf32, #tpu.memory_space<vmem>>, %arg2: memref<1x32xf32, #tpu.memory_space<vmem>>, %arg3: memref<1x32xf32, #tpu.memory_space<vmem>>, %arg4: memref<8x128xf32, #tpu.memory_space<vmem>>) attributes {dimension_semantics = [#tpu.dimension_semantics<parallel>], iteration_bounds = array<i64: 1>, scalar_prefetch = 0 : i64, scratch_operands = 0 : i64, tpu.core_type = #tpu.core_type<tc>, window_params = [{transform_indices = @transform_0, window_bounds = array<i64: 8, 128>}, {pipeline_mode = #tpu.pipeline_mode<synchronous>, transform_indices = @transform_1, window_bounds = array<i64: 1, 32>}, {pipeline_mode = #tpu.pipeline_mode<synchronous>, transform_indices = @transform_2, window_bounds = array<i64: 1, 32>}, {transform_indices = @transform_3, window_bounds = array<i64: 8, 128>}]} {
    %c0 = arith.constant 0 : index
    %c0_0 = arith.constant 0 : index
    %0 = vector.load %arg1[%c0, %c0_0] : memref<8x128xf32, #tpu.memory_space<vmem>>, vector<8x128xf32>
    %c0_1 = arith.constant 0 : index
    %c0_2 = arith.constant 0 : index
    %1 = vector.load %arg2[%c0_1, %c0_2] : memref<1x32xf32, #tpu.memory_space<vmem>>, vector<1x32xf32>
    %c0_3 = arith.constant 0 : index
    %c0_4 = arith.constant 0 : index
    %2 = vector.load %arg3[%c0_3, %c0_4] : memref<1x32xf32, #tpu.memory_space<vmem>>, vector<1x32xf32>
    %3 = vector.extract_strided_slice %0 {offsets = [0, 0], sizes = [8, 32], strides = [1, 1]} : vector<8x128xf32> to vector<8x32xf32>
    %cst = arith.constant dense<0.000000e+00> : vector<8xf32>
    %4 = vector.multi_reduction <add>, %3, %cst [1] : vector<8x32xf32> to vector<8xf32>
    %5 = vector.shape_cast %4 : vector<8xf32> to vector<8x1xf32>
    %6 = arith.mulf %3, %3 : vector<8x32xf32>
    %cst_5 = arith.constant dense<0.000000e+00> : vector<8xf32>
    %7 = vector.multi_reduction <add>, %6, %cst_5 [1] : vector<8x32xf32> to vector<8xf32>
    %8 = vector.shape_cast %7 : vector<8xf32> to vector<8x1xf32>
    %cst_6 = arith.constant 3.125000e-02 : f32
    %9 = vector.broadcast %cst_6 : f32 to vector<8x1xf32>
    %10 = arith.mulf %5, %9 : vector<8x1xf32>
    %11 = arith.mulf %10, %5 : vector<8x1xf32>
    %12 = arith.subf %8, %11 : vector<8x1xf32>
    %cst_7 = arith.constant 0.000000e+00 : f32
    %13 = vector.broadcast %cst_7 : f32 to vector<8x1xf32>
    %14 = arith.maximumf %12, %13 : vector<8x1xf32>
    %cst_8 = arith.constant 0.0322580636 : f32
    %15 = vector.broadcast %cst_8 : f32 to vector<8x1xf32>
    %16 = arith.mulf %14, %15 : vector<8x1xf32>
    %17 = math.sqrt %16 : vector<8x1xf32>
    %cst_9 = arith.constant 9.99999997E-7 : f32
    %18 = vector.broadcast %cst_9 : f32 to vector<8x1xf32>
    %19 = arith.addf %17, %18 : vector<8x1xf32>
    %20 = tpu.reciprocal %19 : vector<8x1xf32> -> vector<8x1xf32>
    %21 = vector.broadcast %10 : vector<8x1xf32> to vector<8x32xf32>
    %22 = arith.subf %3, %21 : vector<8x32xf32>
    %23 = vector.broadcast %20 : vector<8x1xf32> to vector<8x32xf32>
    %24 = arith.mulf %22, %23 : vector<8x32xf32>
    %25 = vector.broadcast %1 : vector<1x32xf32> to vector<8x32xf32>
    %26 = arith.mulf %25, %24 : vector<8x32xf32>
    %27 = vector.broadcast %2 : vector<1x32xf32> to vector<8x32xf32>
    %28 = arith.addf %26, %27 : vector<8x32xf32>
    %29 = vector.extract_strided_slice %0 {offsets = [0, 32], sizes = [8, 32], strides = [1, 1]} : vector<8x128xf32> to vector<8x32xf32>
    %cst_10 = arith.constant dense<0.000000e+00> : vector<8xf32>
    %30 = vector.multi_reduction <add>, %29, %cst_10 [1] : vector<8x32xf32> to vector<8xf32>
    %31 = vector.shape_cast %30 : vector<8xf32> to vector<8x1xf32>
    %32 = arith.mulf %29, %29 : vector<8x32xf32>
    %cst_11 = arith.constant dense<0.000000e+00> : vector<8xf32>
    %33 = vector.multi_reduction <add>, %32, %cst_11 [1] : vector<8x32xf32> to vector<8xf32>
    %34 = vector.shape_cast %33 : vector<8xf32> to vector<8x1xf32>
    %cst_12 = arith.constant 3.125000e-02 : f32
    %35 = vector.broadcast %cst_12 : f32 to vector<8x1xf32>
    %36 = arith.mulf %31, %35 : vector<8x1xf32>
    %37 = arith.mulf %36, %31 : vector<8x1xf32>
    %38 = arith.subf %34, %37 : vector<8x1xf32>
    %cst_13 = arith.constant 0.000000e+00 : f32
    %39 = vector.broadcast %cst_13 : f32 to vector<8x1xf32>
    %40 = arith.maximumf %38, %39 : vector<8x1xf32>
    %cst_14 = arith.constant 0.0322580636 : f32
    %41 = vector.broadcast %cst_14 : f32 to vector<8x1xf32>
    %42 = arith.mulf %40, %41 : vector<8x1xf32>
    %43 = math.sqrt %42 : vector<8x1xf32>
    %cst_15 = arith.constant 9.99999997E-7 : f32
    %44 = vector.broadcast %cst_15 : f32 to vector<8x1xf32>
    %45 = arith.addf %43, %44 : vector<8x1xf32>
    %46 = tpu.reciprocal %45 : vector<8x1xf32> -> vector<8x1xf32>
    %47 = vector.broadcast %36 : vector<8x1xf32> to vector<8x32xf32>
    %48 = arith.subf %29, %47 : vector<8x32xf32>
    %49 = vector.broadcast %46 : vector<8x1xf32> to vector<8x32xf32>
    %50 = arith.mulf %48, %49 : vector<8x32xf32>
    %51 = vector.broadcast %1 : vector<1x32xf32> to vector<8x32xf32>
    %52 = arith.mulf %51, %50 : vector<8x32xf32>
    %53 = vector.broadcast %2 : vector<1x32xf32> to vector<8x32xf32>
    %54 = arith.addf %52, %53 : vector<8x32xf32>
    %55 = vector.extract_strided_slice %0 {offsets = [0, 64], sizes = [8, 32], strides = [1, 1]} : vector<8x128xf32> to vector<8x32xf32>
    %cst_16 = arith.constant dense<0.000000e+00> : vector<8xf32>
    %56 = vector.multi_reduction <add>, %55, %cst_16 [1] : vector<8x32xf32> to vector<8xf32>
    %57 = vector.shape_cast %56 : vector<8xf32> to vector<8x1xf32>
    %58 = arith.mulf %55, %55 : vector<8x32xf32>
    %cst_17 = arith.constant dense<0.000000e+00> : vector<8xf32>
    %59 = vector.multi_reduction <add>, %58, %cst_17 [1] : vector<8x32xf32> to vector<8xf32>
    %60 = vector.shape_cast %59 : vector<8xf32> to vector<8x1xf32>
    %cst_18 = arith.constant 3.125000e-02 : f32
    %61 = vector.broadcast %cst_18 : f32 to vector<8x1xf32>
    %62 = arith.mulf %57, %61 : vector<8x1xf32>
    %63 = arith.mulf %62, %57 : vector<8x1xf32>
    %64 = arith.subf %60, %63 : vector<8x1xf32>
    %cst_19 = arith.constant 0.000000e+00 : f32
    %65 = vector.broadcast %cst_19 : f32 to vector<8x1xf32>
    %66 = arith.maximumf %64, %65 : vector<8x1xf32>
    %cst_20 = arith.constant 0.0322580636 : f32
    %67 = vector.broadcast %cst_20 : f32 to vector<8x1xf32>
    %68 = arith.mulf %66, %67 : vector<8x1xf32>
    %69 = math.sqrt %68 : vector<8x1xf32>
    %cst_21 = arith.constant 9.99999997E-7 : f32
    %70 = vector.broadcast %cst_21 : f32 to vector<8x1xf32>
    %71 = arith.addf %69, %70 : vector<8x1xf32>
    %72 = tpu.reciprocal %71 : vector<8x1xf32> -> vector<8x1xf32>
    %73 = vector.broadcast %62 : vector<8x1xf32> to vector<8x32xf32>
    %74 = arith.subf %55, %73 : vector<8x32xf32>
    %75 = vector.broadcast %72 : vector<8x1xf32> to vector<8x32xf32>
    %76 = arith.mulf %74, %75 : vector<8x32xf32>
    %77 = vector.broadcast %1 : vector<1x32xf32> to vector<8x32xf32>
    %78 = arith.mulf %77, %76 : vector<8x32xf32>
    %79 = vector.broadcast %2 : vector<1x32xf32> to vector<8x32xf32>
    %80 = arith.addf %78, %79 : vector<8x32xf32>
    %81 = vector.extract_strided_slice %0 {offsets = [0, 96], sizes = [8, 32], strides = [1, 1]} : vector<8x128xf32> to vector<8x32xf32>
    %cst_22 = arith.constant dense<0.000000e+00> : vector<8xf32>
    %82 = vector.multi_reduction <add>, %81, %cst_22 [1] : vector<8x32xf32> to vector<8xf32>
    %83 = vector.shape_cast %82 : vector<8xf32> to vector<8x1xf32>
    %84 = arith.mulf %81, %81 : vector<8x32xf32>
    %cst_23 = arith.constant dense<0.000000e+00> : vector<8xf32>
    %85 = vector.multi_reduction <add>, %84, %cst_23 [1] : vector<8x32xf32> to vector<8xf32>
    %86 = vector.shape_cast %85 : vector<8xf32> to vector<8x1xf32>
    %cst_24 = arith.constant 3.125000e-02 : f32
    %87 = vector.broadcast %cst_24 : f32 to vector<8x1xf32>
    %88 = arith.mulf %83, %87 : vector<8x1xf32>
    %89 = arith.mulf %88, %83 : vector<8x1xf32>
    %90 = arith.subf %86, %89 : vector<8x1xf32>
    %cst_25 = arith.constant 0.000000e+00 : f32
    %91 = vector.broadcast %cst_25 : f32 to vector<8x1xf32>
    %92 = arith.maximumf %90, %91 : vector<8x1xf32>
    %cst_26 = arith.constant 0.0322580636 : f32
    %93 = vector.broadcast %cst_26 : f32 to vector<8x1xf32>
    %94 = arith.mulf %92, %93 : vector<8x1xf32>
    %95 = math.sqrt %94 : vector<8x1xf32>
    %cst_27 = arith.constant 9.99999997E-7 : f32
    %96 = vector.broadcast %cst_27 : f32 to vector<8x1xf32>
    %97 = arith.addf %95, %96 : vector<8x1xf32>
    %98 = tpu.reciprocal %97 : vector<8x1xf32> -> vector<8x1xf32>
    %99 = vector.broadcast %88 : vector<8x1xf32> to vector<8x32xf32>
    %100 = arith.subf %81, %99 : vector<8x32xf32>
    %101 = vector.broadcast %98 : vector<8x1xf32> to vector<8x32xf32>
    %102 = arith.mulf %100, %101 : vector<8x32xf32>
    %103 = vector.broadcast %1 : vector<1x32xf32> to vector<8x32xf32>
    %104 = arith.mulf %103, %102 : vector<8x32xf32>
    %105 = vector.broadcast %2 : vector<1x32xf32> to vector<8x32xf32>
    %106 = arith.addf %104, %105 : vector<8x32xf32>
    %107 = tpu.concatenate %28, %54, %80, %106 in 1 : vector<8x32xf32>, vector<8x32xf32>, vector<8x32xf32>, vector<8x32xf32> -> vector<8x128xf32>
    %c0_28 = arith.constant 0 : index
    %c0_29 = arith.constant 0 : index
    %108 = vector.load %arg4[%c0_28, %c0_29] : memref<8x128xf32, #tpu.memory_space<vmem>>, vector<8x128xf32>
    tpu.vector_store %arg4[%c0_28, %c0_29], %107 {strides = array<i32>} : memref<8x128xf32, #tpu.memory_space<vmem>>, vector<8x128xf32>,
    return
  }
  func.func @transform_0(%arg0: i32) -> (i32, i32) {
    %c0_i32 = arith.constant 0 : i32
    %c0_i32_0 = arith.constant 0 : i32
    return %arg0, %c0_i32 : i32, i32
  }
  func.func @transform_1(%arg0: i32) -> (i32, i32) {
    %c0_i32 = arith.constant 0 : i32
    %c0_i32_0 = arith.constant 0 : i32
    %c0_i32_1 = arith.constant 0 : i32
    return %c0_i32, %c0_i32_0 : i32, i32
  }
  func.func @transform_2(%arg0: i32) -> (i32, i32) {
    %c0_i32 = arith.constant 0 : i32
    %c0_i32_0 = arith.constant 0 : i32
    %c0_i32_1 = arith.constant 0 : i32
    return %c0_i32, %c0_i32_0 : i32, i32
  }
  func.func @transform_3(%arg0: i32) -> (i32, i32) {
    %c0_i32 = arith.constant 0 : i32
    %c0_i32_0 = arith.constant 0 : i32
    return %arg0, %c0_i32 : i32, i32
  }
}

</mosaic_0001>

<bundles_post_ra>
// kernel: tpu_custom_call.1
= control target key start
LH: loop header
LB: loop body
LE: loop exit
PB: predicated region body
PF: predicated region fallthrough
CT: control target
= control target key end

     0   :  { %8 = vsyncpa [#allocation3], 0  ;;  %s487_s0 = inlined_call_operand.hbm [shape: f32[4,128], index: 0, kind: input, shape index: {}]   ;;  %s488_s1 = inlined_call_operand.hbm [shape: f32[1,32], index: 1, kind: input, shape index: {}]   ;;  %s489_s2 = inlined_call_operand.vmem [shape: f32[1,32], index: 2, kind: input, shape index: {}]   ;;  %s490_s3 = inlined_call_operand.hbm [shape: f32[4,128], index: 3, kind: output, shape index: {}]  }
   0x1   :  { %9 = vsyncpa [#allocation6], 0 }
   0x2   :  { %10 = vsyncpa [#allocation4], 0 }
   0x3   :  { %14 = vsyncadd [#allocation3], 64  ;;  %s15_s14 = sshll.u32 %s487_s0, 4  ;;  %s397_s15 = smov [#allocation2]   ;;  %s16_s14 = int_to_ptr.hbm [resolvable:$true] %s15_s14 }
   0x4   :  { %s17_s16 = sshll.u32 %s397_s15, 4  ;;  %s29_s19 = sshll.u32 %s488_s1, 4  ;;  %s18_s16 = int_to_ptr.vmem [resolvable:$true] %s17_s16  ;;  %s30_s19 = int_to_ptr.hbm [resolvable:$true] %s29_s19 }
   0x5   :  { %s398_s20 = smov 64   ;;  %s399_s21 = smov 4  }
   0x6   :  { %23 = dma.hbm_to_vmem [thread:$0]  %s16_s14, 64, %s18_s16, [#allocation3], %s398_s20, %s398_s20, %s399_s21  }
   0x7   :  { %s400_s22 = smov [#allocation5]  }
   0x8   :  { %s31_s23 = sshll.u32 %s400_s22, 4  ;;  %s32_s23 = int_to_ptr.vmem [resolvable:$true] %s31_s23 }
   0x9   :  { %34 = dma.hbm_to_vmem [thread:$0]  %s30_s19, 16, %s32_s23, [#allocation6]  }
   0xa   :  { %391 = dma.done.wait [#allocation3], 128  }
   0xb   :  { %392 = vsyncadd [#allocation3], 4294967168 }
   0xc   :  { %393 = dma.done.wait [#allocation6], 16  }
   0xd   :  { %394 = vsyncadd [#allocation6], 4294967280  ;;  %v433_v0 = vld [vmem:[#allocation2] sm:$0xff]  ;;  %s401_s0 = smov 32   ;;  %s402_s1 = smov 96   ;;  %vm48_vm0 = vcmask 261120  }
   0xe   :  { %204 = vrot.lane.b32.xlu1 %v433_v0, %s401_s0  ;;  %99 = vrot.lane.b32.xlu0 %v433_v0, %s402_s1  ;;  %v52_v1 = vmul.f32 %v433_v0, %v433_v0  ;;  %v49_v14 = vsel %vm48_vm0, %v433_v0, 0.0 }
  0x10   :  { %158 = vrot.lane.b32.xlu2 %v52_v1, %s398_s20  ;;  %v53_v15 = vsel %vm48_vm0, %v52_v1, 0.0 }
  0x16   :  { %152 = vrot.lane.b32.xlu0 %v433_v0, %s398_s20  ;;  %106 = vrot.lane.b32.xlu1 %v52_v1, %s402_s1 }
  0x18   :  { %210 = vrot.lane.b32.xlu2 %v52_v1, %s401_s0 }
  0x6a   :  { %v159_v6 = vpop.permute.xlu2 %158 }
  0x6b   :  { %v161_v9 = vsel %vm48_vm0, %v159_v6, 0.0 }
  0x72   :  { %v211_v12 = vpop.permute.xlu2 %210 }
  0x73   :  { %v213_v13 = vsel %vm48_vm0, %v211_v12, 0.0 }
  0x80   :  { %v205_v2 = vpop.permute.xlu1 %204  ;;  %v100_v3 = vpop.permute.xlu0 %99 }
  0x81   :  { %v207_v4 = vsel %vm48_vm0, %v205_v2, 0.0  ;;  %v102_v5 = vsel %vm48_vm0, %v100_v3, 0.0 }
  0x82   :  { %208 = vadd.xlane.f32.xlu2 %v207_v4  ;;  %103 = vadd.xlane.f32.xlu0 %v102_v5 }
  0x88   :  { %v153_v7 = vpop.permute.xlu0 %152  ;;  %v107_v8 = vpop.permute.xlu1 %106 }
  0x89   :  { %v155_v10 = vsel %vm48_vm0, %v153_v7, 0.0  ;;  %v109_v11 = vsel %vm48_vm0, %v107_v8, 0.0 }
  0x8a   :  { %156 = vadd.xlane.f32.xlu1 %v155_v10  ;;  %110 = vadd.xlane.f32.xlu2 %v109_v11 }
  0x8b   :  { %162 = vadd.xlane.f32.xlu0 %v161_v9 }
  0x92   :  { %214 = vadd.xlane.f32.xlu1 %v213_v13  ;;  %50 = vadd.xlane.f32.xlu2 %v49_v14 }
  0x93   :  { %54 = vadd.xlane.f32.xlu0 %v53_v15 }
  0xf5   :  { %v209_v16 = vpop.xlane.xlu2 %208  ;;  %v104_v17 = vpop.xlane.xlu0 %103 }
  0xf6   :  { %v455_v18 = vmul.f32 0.03125, %v104_v17  ;;  %v460_v25 = vmul.f32 0.03125, %v209_v16 }
  0xf8   :  { %v113_v19 = vmul.f32 %v455_v18, %v104_v17  ;;  %v217_v30 = vmul.f32 %v460_v25, %v209_v16 }
  0xfd   :  { %v111_v20 = vpop.xlane.xlu2 %110  ;;  %v157_v21 = vpop.xlane.xlu1 %156 }
  0xfe   :  { %v114_v22 = vsub.f32 %v111_v20, %v113_v19  ;;  %v458_v23 = vmul.f32 0.03125, %v157_v21  ;;  %v163_v24 = vpop.xlane.xlu0 %162  ;;  %v144_v19 = vsub.f32 %v433_v0, %v455_v18 }
 0x100   :  { %v115_v26 = vmax.f32 %v114_v22, 0.0  ;;  %v165_v27 = vmul.f32 %v458_v23, %v157_v21  ;;  %v196_v18 = vsub.f32 %v433_v0, %v458_v23 }
 0x102   :  { %v116_v28 = vmul.f32 0.032258064, %v115_v26  ;;  %v166_v29 = vsub.f32 %v163_v24, %v165_v27 }
 0x104   :  { %303 = vrsqrt.f32 %v116_v28  ;;  %v167_v31 = vmax.f32 %v166_v29, 0.0  ;;  %vm124_vm1 = vcmp.eq.f32.partialorder %v116_v28, inf  ;;  %v127_v52 = vand.u32 2147483648, %v116_v28 }
 0x105   :  { %v215_v32 = vpop.xlane.xlu1 %214  ;;  %vm126_vm2 = vcmp.eq.f32.partialorder %v116_v28, 0.0  ;;  %v51_v23 = vpop.xlane.xlu2 %50 }
 0x106   :  { %v168_v33 = vmul.f32 0.032258064, %v167_v31  ;;  %v218_v34 = vsub.f32 %v215_v32, %v217_v30 }
 0x108   :  { %305 = vrsqrt.f32 %v168_v33  ;;  %v219_v35 = vmax.f32 %v218_v34, 0.0  ;;  %vm176_vm3 = vcmp.eq.f32.partialorder %v168_v33, inf  ;;  %v179_v61 = vand.u32 2147483648, %v168_v33 }
 0x109   :  { %vm178_vm4 = vcmp.eq.f32.partialorder %v168_v33, 0.0 }
 0x10a   :  { %v304_v36 = vpop.eup %303  ;;  %v220_v37 = vmul.f32 0.032258064, %v219_v35 }
 0x10b   :  { %v118_v38 = vmul.f32 %v304_v36, %v116_v28 }
 0x10c   :  { %307 = vrsqrt.f32 %v220_v37  ;;  %vm228_vm5 = vcmp.eq.f32.partialorder %v220_v37, inf  ;;  %v231_v4 = vand.u32 2147483648, %v220_v37  ;;  %vm230_vm6 = vcmp.eq.f32.partialorder %v220_v37, 0.0 }
 0x10d   :  { %v119_v39 = vmul.f32 %v304_v36, %v118_v38 }
 0x10e   :  { %v306_v40 = vpop.eup %305 }
 0x10f   :  { %v120_v41 = vmul.f32 0.5, %v119_v39  ;;  %v170_v42 = vmul.f32 %v306_v40, %v168_v33 }
 0x111   :  { %v121_v43 = vsub.f32 1.5, %v120_v41  ;;  %v171_v44 = vmul.f32 %v306_v40, %v170_v42  ;;  %v248_v41 = vsub.f32 %v433_v0, %v460_v25 }
 0x112   :  { %v308_v45 = vpop.eup %307 }
 0x113   :  { %v122_v46 = vmul.f32 %v304_v36, %v121_v43  ;;  %v172_v47 = vmul.f32 0.5, %v171_v44  ;;  %v222_v48 = vmul.f32 %v308_v45, %v220_v37 }
 0x115   :  { %v123_v49 = vmul.f32 %v122_v46, %v116_v28  ;;  %v223_v50 = vmul.f32 %v308_v45, %v222_v48  ;;  %v173_v51 = vsub.f32 1.5, %v172_v47  ;;  %v55_v46 = vpop.xlane.xlu0 %54 }
 0x117   :  { %v224_v53 = vmul.f32 0.5, %v223_v50  ;;  %v125_v54 = vsel %vm124_vm1, %v116_v28, %v123_v49  ;;  %v174_v55 = vmul.f32 %v306_v40, %v173_v51 }
 0x118   :  { %v128_v56 = vsel %vm126_vm2, %v127_v52, %v125_v54 }
 0x119   :  { %v225_v57 = vsub.f32 1.5, %v224_v53  ;;  %v129_v58 = vadd.f32 1e-06, %v128_v56  ;;  %v175_v59 = vmul.f32 %v174_v55, %v168_v33 }
 0x11b   :  { %v226_v60 = vmul.f32 %v308_v45, %v225_v57  ;;  %309 = vrcp.f32 %v129_v58  ;;  %v177_v62 = vsel %vm176_vm3, %v168_v33, %v175_v59  ;;  %v141_v10 = vand.u32 2147483648, %v129_v58 }
 0x11c   :  { %v180_v1 = vsel %vm178_vm4, %v179_v61, %v177_v62  ;;  %v139_v13 = vand.u32 2147483647, %v129_v58  ;;  %vm135_vm8 = vweird.f32 %v129_v58  ;;  %v56_v45 = vmul.f32 0.03125, %v51_v23 }
 0x11d   :  { %v227_v63 = vmul.f32 %v226_v60, %v220_v37  ;;  %v181_v2 = vadd.f32 1e-06, %v180_v1  ;;  %v142_v16 = vor.u32 1.1754944e-38, %v141_v10 }
 0x11e   :  { %vm140_vm10 = vcmp.eq.f32.partialorder %v139_v13, 8.507059e+37  ;;  %v57_v47 = vmul.f32 %v56_v45, %v51_v23 }
 0x11f   :  { %v229_v3 = vsel %vm228_vm5, %v220_v37, %v227_v63  ;;  %311 = vrcp.f32 %v181_v2  ;;  %v193_v21 = vand.u32 2147483648, %v181_v2  ;;  %v191_v27 = vand.u32 2147483647, %v181_v2 }
 0x120   :  { %v232_v6 = vsel %vm230_vm6, %v231_v4, %v229_v3  ;;  %vm187_vm12 = vweird.f32 %v181_v2  ;;  %v58_v48 = vsub.f32 %v55_v46, %v57_v47 }
 0x121   :  { %v310_v5 = vpop.eup %309  ;;  %v233_v8 = vadd.f32 1e-06, %v232_v6  ;;  %v194_v31 = vor.u32 1.1754944e-38, %v193_v21  ;;  %vm192_vm14 = vcmp.eq.f32.partialorder %v191_v27, 8.507059e+37 }
 0x122   :  { %v131_v7 = vmul.f32 %v310_v5, %v129_v58  ;;  %vm136_vm7 = vweird.f32 %v310_v5  ;;  %v59_v49 = vmax.f32 %v58_v48, 0.0 }
 0x123   :  { %313 = vrcp.f32 %v233_v8  ;;  %vm137_vm9 = vmor %vm135_vm8, %vm136_vm7  ;;  %v245_v34 = vand.u32 2147483648, %v233_v8  ;;  %v243_v37 = vand.u32 2147483647, %v233_v8  ;;  %vm239_vm1 = vweird.f32 %v233_v8 }
 0x124   :  { %v132_v9 = vsub.f32 1.0, %v131_v7  ;;  %v60_v50 = vmul.f32 0.032258064, %v59_v49 }
 0x125   :  { %v312_v11 = vpop.eup %311  ;;  %v246_v40 = vor.u32 1.1754944e-38, %v245_v34  ;;  %vm244_vm3 = vcmp.eq.f32.partialorder %v243_v37, 8.507059e+37 }
 0x126   :  { %v133_v12 = vmul.f32 %v310_v5, %v132_v9  ;;  %v183_v14 = vmul.f32 %v312_v11, %v181_v2  ;;  %vm188_vm11 = vweird.f32 %v312_v11  ;;  %315 = vrsqrt.f32 %v60_v50  ;;  %v301_v9 = vld [vmem:[#allocation5] ss:$0 sm:$0xff] }
 0x127   :  { %vm189_vm13 = vmor %vm187_vm12, %vm188_vm11  ;;  %vm68_vm4 = vcmp.eq.f32.partialorder %v60_v50, inf  ;;  %v71_v57 = vand.u32 2147483648, %v60_v50  ;;  %vm70_vm5 = vcmp.eq.f32.partialorder %v60_v50, 0.0  ;;  %v88_v2 = vsub.f32 %v433_v0, %v56_v45 }
 0x128   :  { %v134_v15 = vadd.f32 %v310_v5, %v133_v12  ;;  %v184_v17 = vsub.f32 1.0, %v183_v14  ;;  %vm271_vm11 = vcmask 785408  }
 0x129   :  { %v314_v22 = vpop.eup %313 }
 0x12a   :  { %v138_v20 = vsel %vm137_vm9, %v310_v5, %v134_v15  ;;  %v185_v26 = vmul.f32 %v312_v11, %v184_v17  ;;  %v235_v29 = vmul.f32 %v314_v22, %v233_v8  ;;  %vm240_vm15 = vweird.f32 %v314_v22 }
 0x12b   :  { %v143_v24 = vsel %vm140_vm10, %v142_v16, %v138_v20  ;;  %vm241_vm2 = vmor %vm239_vm1, %vm240_vm15  ;;  %vm269_vm10 = vcmask 523264  }
 0x12c   :  { %v145_v28 = vmul.f32 %v144_v19, %v143_v24  ;;  %v186_v30 = vadd.f32 %v312_v11, %v185_v26  ;;  %v236_v32 = vsub.f32 1.0, %v235_v29  ;;  %v316_v51 = vpop.eup %315 }
 0x12d   :  { %v62_v52 = vmul.f32 %v316_v51, %v60_v50 }
 0x12e   :  { %147 = vrot.lane.b32.xlu1 %v145_v28, %s402_s1  ;;  %v190_v33 = vsel %vm189_vm13, %v312_v11, %v186_v30  ;;  %v237_v36 = vmul.f32 %v314_v22, %v236_v32  ;;  %v302_v11 = vld [vmem:[%s489_s2] ss:$0 sm:$0xff] }
 0x12f   :  { %v195_v35 = vsel %vm192_vm14, %v194_v31, %v190_v33  ;;  %v63_v53 = vmul.f32 %v316_v51, %v62_v52 }
 0x130   :  { %v197_v38 = vmul.f32 %v196_v18, %v195_v35  ;;  %v238_v39 = vadd.f32 %v314_v22, %v237_v36 }
 0x131   :  { %v64_v54 = vmul.f32 0.5, %v63_v53 }
 0x132   :  { %199 = vrot.lane.b32.xlu2 %v197_v38, %s398_s20  ;;  %v242_v42 = vsel %vm241_vm2, %v314_v22, %v238_v39 }
 0x133   :  { %v247_v43 = vsel %vm244_vm3, %v246_v40, %v242_v42  ;;  %v65_v55 = vsub.f32 1.5, %v64_v54 }
 0x134   :  { %v249_v44 = vmul.f32 %v248_v41, %v247_v43 }
 0x135   :  { %v66_v25 = vmul.f32 %v316_v51, %v65_v55 }
 0x136   :  { %251 = vrot.lane.b32.xlu0 %v249_v44, %s401_s0 }
 0x137   :  { %v67_v56 = vmul.f32 %v66_v25, %v60_v50 }
 0x139   :  { %v69_v58 = vsel %vm68_vm4, %v60_v50, %v67_v56 }
 0x13a   :  { %v72_v59 = vsel %vm70_vm5, %v71_v57, %v69_v58 }
 0x13b   :  { %v73_v60 = vadd.f32 1e-06, %v72_v59 }
 0x13d   :  { %317 = vrcp.f32 %v73_v60  ;;  %v85_v3 = vand.u32 2147483648, %v73_v60  ;;  %vm79_vm6 = vweird.f32 %v73_v60  ;;  %v83_v5 = vand.u32 2147483647, %v73_v60 }
 0x13f   :  { %v86_v6 = vor.u32 1.1754944e-38, %v85_v3  ;;  %vm84_vm9 = vcmp.eq.f32.partialorder %v83_v5, 8.507059e+37 }
 0x143   :  { %v318_v61 = vpop.eup %317 }
 0x144   :  { %v75_v62 = vmul.f32 %v318_v61, %v73_v60  ;;  %vm80_vm7 = vweird.f32 %v318_v61 }
 0x145   :  { %vm81_vm8 = vmor %vm79_vm6, %vm80_vm7 }
 0x146   :  { %v76_v63 = vsub.f32 1.0, %v75_v62 }
 0x148   :  { %v77_v1 = vmul.f32 %v318_v61, %v76_v63 }
 0x14a   :  { %v78_v4 = vadd.f32 %v318_v61, %v77_v1 }
 0x14c   :  { %v82_v7 = vsel %vm81_vm8, %v318_v61, %v78_v4 }
 0x14d   :  { %v87_v8 = vsel %vm84_vm9, %v86_v6, %v82_v7 }
 0x14e   :  { %v89_v10 = vmul.f32 %v88_v2, %v87_v8 }
 0x150   :  { %v93_v12 = vmul.f32 %v301_v9, %v89_v10 }
 0x152   :  { %v97_v13 = vadd.f32 %v302_v11, %v93_v12 }
 0x18c   :  { %v200_v14 = vpop.permute.xlu2 %199 }
 0x18d   :  { %v202_v0 = vmul.f32 %v301_v9, %v200_v14 }
 0x18f   :  { %v203_v15 = vadd.f32 %v302_v11, %v202_v0 }
 0x191   :  { %261 = vrot.lane.b32.xlu0 %v203_v15, %s398_s20 }
 0x1a0   :  { %v148_v16 = vpop.permute.xlu1 %147 }
 0x1a1   :  { %v150_v17 = vmul.f32 %v301_v9, %v148_v16 }
 0x1a3   :  { %v151_v19 = vadd.f32 %v302_v11, %v150_v17 }
 0x1a5   :  { %257 = vrot.lane.b32.xlu1 %v151_v19, %s401_s0 }
 0x1a8   :  { %v252_v20 = vpop.permute.xlu0 %251 }
 0x1a9   :  { %v254_v21 = vmul.f32 %v301_v9, %v252_v20 }
 0x1ab   :  { %v255_v22 = vadd.f32 %v302_v11, %v254_v21 }
 0x1ad   :  { %265 = vrot.lane.b32.xlu2 %v255_v22, %s402_s1 }
 0x203   :  { %v262_v26 = vpop.permute.xlu0 %261 }
 0x207   :  { %v266_v28 = vpop.permute.xlu2 %265 }
 0x217   :  { %v258_v24 = vpop.permute.xlu1 %257 }
 0x218   :  { %v268_v27 = vsel %vm48_vm0, %v97_v13, %v258_v24 }
 0x219   :  { %v270_v29 = vsel %vm269_vm10, %v268_v27, %v262_v26 }
 0x21a   :  { %v272_v30 = vsel %vm271_vm11, %v270_v29, %v266_v28 }
 0x21b   :  { %273 = vst [vmem:[#allocation7] sm:$0xff] %v272_v30 }
 0x21c   :  { %277 = vsyncadd [#allocation4], 64  ;;  %s280_s27 = sshll.u32 %s490_s3, 4  ;;  %s403_s28 = smov [#allocation7]   ;;  %s281_s27 = int_to_ptr.hbm [resolvable:$true] %s280_s27 }
 0x21d   :  { %s278_s29 = sshll.u32 %s403_s28, 4  ;;  %s279_s29 = int_to_ptr.vmem [resolvable:$true] %s278_s29 }
 0x21e   :  { %286 = dma.vmem_to_hbm [thread:$0]  %s279_s29, 64, %s281_s27, [#allocation4], %s398_s20, %s398_s20, %s399_s21  }
 0x21f   :  { %395 = dma.done.wait [#allocation4], 128  }
 0x220   :  { %396 = vsyncadd [#allocation4], 4294967168 }
 0x221   :  { %291 = vsyncpa [#allocation3], 1 }
 0x222   :  { %292 = vsyncpa [#allocation6], 1 }
 0x223   :  { %293 = vsyncpa [#allocation4], 1 }

</bundles_post_ra>
